<compile_context>
chip_gen: v7x
topology: tpu7x:2x2x1
jax: 0.10.0
libtpu: 0.0.40
codegen_flags: <defaults>
</compile_context>

<pallas_src>
import functools

import jax
import jax.numpy as jnp
from jax import lax
from jax.experimental import pallas as pl
from jax.experimental.pallas import tpu as pltpu

# ----------------------------- configuration -----------------------------
FEAT_CHANNELS = 16        # must be a multiple of 16 (GroupNorm(16, C))
STACKED_CONVS = 2
LA_DOWN_RATE = 8
IN_CHANNELS = FEAT_CHANNELS * STACKED_CONVS          # 32
MID_CHANNELS = IN_CHANNELS // LA_DOWN_RATE           # 4
GN_GROUPS = 16
GN_EPS = 1e-5


# ------------------------------- kernel ----------------------------------
def _task_decomp_kernel(feat_ref, la1_w_ref, la1_b_ref, la2_w_ref, la2_b_ref,
                        sel_ref, red_w_ref, gn_g_ref, gn_b_ref, out_ref, y_ref,
                        *, hw, chunk, gn_groups, eps):
    """feat_ref: (Bt, C_in, HW) io-dtype; out_ref: (Bt, C, HW) io-dtype;
    y_ref: (C, HW) f32 VMEM scratch (per-image staging for the GN passes)."""
    bt, in_c, _ = feat_ref.shape
    C = red_w_ref.shape[0]
    gs = C // gn_groups                    # channels per GroupNorm group
    inv_hw = jnp.float32(1.0 / hw)

    # Static lane-chunk table covering exactly [0, hw) -> bounded live vregs.
    spans = [(o, min(chunk, hw - o)) for o in range(0, hw, chunk)]

    # Tile-invariant tiny weights: load once per grid step, reuse for all Bt.
    la1_w = la1_w_ref[...]                 # (mid, C_in)
    la1_b = la1_b_ref[...]                 # (mid, 1)
    la2_w = la2_w_ref[...]                 # (S, mid)
    la2_b = la2_b_ref[...]                 # (S, 1)
    sel = sel_ref[...]                     # (S, C_in) one-hot scale selector
    red_w = red_w_ref[...]                 # (C, C_in)
    gn_g = gn_g_ref[...]                   # (C, 1)
    gn_b = gn_b_ref[...]                   # (C, 1)

    if gs > 1:                             # generic GroupNorm fallback (trace-time)
        gr = lax.broadcasted_iota(jnp.int32, (gn_groups, C), 0)
        gc = lax.broadcasted_iota(jnp.int32, (gn_groups, C), 1)
        onehot_g = (gc // gs == gr).astype(jnp.float32)          # (G, C)
        cr = lax.broadcasted_iota(jnp.int32, (C, gn_groups), 0)
        cc = lax.broadcasted_iota(jnp.int32, (C, gn_groups), 1)
        onehot_c = (cr // gs == cc).astype(jnp.float32)          # (C, G)

    def group_stat(col_sum):               # (C,1) per-channel sums -> per-channel stat
        if gs == 1:                        # configured case: group == channel
            return col_sum * inv_hw
        g = jnp.dot(onehot_g, col_sum,
                    preferred_element_type=jnp.float32) * jnp.float32(1.0 / (gs * hw))
        return jnp.dot(onehot_c, g, preferred_element_type=jnp.float32)

    def process(b):
        # ---- pass A: adaptive_avg_pool2d(feat, (1,1)) over the true extent ----
        asum = jnp.zeros((in_c, 1), jnp.float32)
        for o, wd in spans:
            fch = feat_ref[b, :, o:o + wd].astype(jnp.float32)
            asum = asum + jnp.sum(fch, axis=1, keepdims=True)
        avg = asum * inv_hw                                        # (C_in, 1)

        # ---- layer-attention MLP: relu(la_conv1) -> sigmoid(la_conv2) ----
        z1 = jnp.dot(la1_w, avg, preferred_element_type=jnp.float32) + la1_b
        z1 = jnp.maximum(z1, 0.0)                                  # (mid, 1)
        w = jax.nn.sigmoid(
            jnp.dot(la2_w, z1, preferred_element_type=jnp.float32) + la2_b)  # (S,1)

        # ---- fold attention into ONE (C, C_in) weight: single fused matmul ----
        scale_row = jnp.sum(w * sel, axis=0, keepdims=True)        # (1, C_in)
        w_full = red_w * scale_row                                 # (C, C_in)

        # ---- pass B: y = w_full @ feat (chunked), staged in f32 VMEM ----
        ysum = jnp.zeros((C, 1), jnp.float32)
        for o, wd in spans:
            fch = feat_ref[b, :, o:o + wd].astype(jnp.float32)
            ych = jnp.dot(w_full, fch, preferred_element_type=jnp.float32)
            y_ref[:, o:o + wd] = ych
            ysum = ysum + jnp.sum(ych, axis=1, keepdims=True)
        mean_c = group_stat(ysum)                                  # (C, 1)

        # ---- pass C: two-pass variance on the VMEM-resident y ----
        ssd = jnp.zeros((C, 1), jnp.float32)
        for o, wd in spans:
            d = y_ref[:, o:o + wd] - mean_c
            ssd = ssd + jnp.sum(d * d, axis=1, keepdims=True)
        var_c = group_stat(ssd)                                    # (C, 1)

        # ---- fold GN affine + mean into one per-channel scale/shift ----
        a_c = lax.rsqrt(var_c + eps) * gn_g                        # (C, 1)
        b_c = gn_b - mean_c * a_c                                  # (C, 1)

        # ---- pass D: normalize + SiLU, cast to io dtype, store ----
        for o, wd in spans:
            t = y_ref[:, o:o + wd] * a_c + b_c
            out_ref[b, :, o:o + wd] = (t * jax.nn.sigmoid(t)).astype(out_ref.dtype)

    if bt <= 2:
        for b in range(bt):                # tiny batch tile: fully unrolled
            process(b)
    else:
        pl.loop(0, bt)(process)            # larger tile: real loop, bounded live ranges


# ------------------------------- wrapper ----------------------------------
def _pick_batch_tile(B, in_c, C, hw, itemsize, budget_bytes=12 << 20):
    """Largest divisor of B whose double-buffered in+out blocks fit the budget,
    preferring an EVEN (>=2) number of grid steps so v7x's two TensorCores and
    the software pipeline stay load-balanced."""
    per_b = 2 * itemsize * hw * (in_c + C)        # double-buffered f32/bf16 in + out
    cap = max(1, budget_bytes // per_b)
    divisors = [d for d in range(1, B + 1) if B % d == 0]
    fit = [d for d in divisors if d <= cap] or [1]
    even = [d for d in fit if (B // d) % 2 == 0]
    multi = [d for d in fit if B // d >= 2]
    if even:
        return max(even)
    if multi:
        return max(multi)
    return max(fit)


def task_decomposition(feat, params, *, batch_tile=None, spatial_chunk=512):
    """feat: (B, in_channels, H, W) NCHW as in PyTorch.  I/O dtype follows
    feat.dtype (pass bfloat16 for ~2x less HBM traffic); math is f32."""
    B, in_c, H, W = feat.shape
    hw = H * W
    C = params["red_w"].shape[0]
    S = params["la2_w"].shape[0]
    io_dtype = feat.dtype

    feat_flat = feat.reshape(B, in_c, hw)          # free reshape; no pad, no copy

    itemsize = jnp.dtype(io_dtype).itemsize
    bt = batch_tile if batch_tile is not None else _pick_batch_tile(
        B, in_c, C, hw, itemsize)
    assert B % bt == 0, (B, bt)
    n_steps = B // bt
    chunk = max(1, min(hw, spatial_chunk))         # static lane-chunk width

    la1_w = params["la1_w"]                        # (mid, in_c)
    la1_b = params["la1_b"].reshape(-1, 1)         # (mid, 1)
    la2_w = params["la2_w"]                        # (S, mid)
    la2_b = params["la2_b"].reshape(-1, 1)         # (S, 1)
    red_w = params["red_w"]                        # (C, S*C) original conv layout
    gn_g = params["gn_g"].reshape(-1, 1)           # (C, 1)
    gn_b = params["gn_b"].reshape(-1, 1)           # (C, 1)
    # sel[s, j] = 1 iff input channel j belongs to scale s (j // C == s).
    sel = (jnp.arange(in_c)[None, :] // C ==
           jnp.arange(S)[:, None]).astype(jnp.float32)            # (S, in_c)

    def full(arr):
        nd = arr.ndim
        return pl.BlockSpec(arr.shape, lambda g, _nd=nd: (0,) * _nd)

    kernel = functools.partial(_task_decomp_kernel, hw=hw, chunk=chunk,
                               gn_groups=GN_GROUPS, eps=GN_EPS)

    out = pl.pallas_call(
        kernel,
        out_shape=jax.ShapeDtypeStruct((B, C, hw), io_dtype),
        grid=(n_steps,),
        in_specs=[
            pl.BlockSpec((bt, in_c, hw), lambda g: (g, 0, 0)),
            full(la1_w), full(la1_b), full(la2_w), full(la2_b),
            full(sel), full(red_w), full(gn_g), full(gn_b),
        ],
        out_specs=pl.BlockSpec((bt, C, hw), lambda g: (g, 0, 0)),
        scratch_shapes=[pltpu.VMEM((C, hw), jnp.float32)],
        compiler_params=pltpu.CompilerParams(
            dimension_semantics=("parallel",),
            vmem_limit_bytes=32 * 1024 * 1024),
    )(feat_flat, la1_w, la1_b, la2_w, la2_b, sel, red_w, gn_g, gn_b)

    return out.reshape(B, C, H, W)


# ---------------------- pure-JAX reference (for checking) -----------------
def task_decomposition_ref(feat, params):
    B, in_c, H, W = feat.shape
    C = params["red_w"].shape[0]
    S = params["la2_w"].shape[0]
    avg = jnp.mean(feat, axis=(2, 3))                              # (B, in_c)
    z1 = jax.nn.relu(avg @ params["la1_w"].T + params["la1_b"])    # (B, mid)
    w = jax.nn.sigmoid(z1 @ params["la2_w"].T + params["la2_b"])   # (B, S)
    Wr = params["red_w"].reshape(C, S, C)
    conv_w = (w[:, None, :, None] * Wr[None]).reshape(B, C, S * C)
    y = jnp.einsum("bij,bjk->bik", conv_w, feat.reshape(B, in_c, H * W))
    gs = C // GN_GROUPS
    yg = y.reshape(B, GN_GROUPS, gs * H * W)
    mean = yg.mean(-1, keepdims=True)
    var = yg.var(-1, keepdims=True)
    yn = ((yg - mean) * lax.rsqrt(var + GN_EPS)).reshape(B, C, H * W)
    yn = yn * params["gn_g"][None, :, None] + params["gn_b"][None, :, None]
    out = yn * jax.nn.sigmoid(yn)
    return out.reshape(B, C, H, W)


# ------------------------- deterministic init -----------------------------
def init_params(key):
    k1, k2, k3, k4 = jax.random.split(key, 4)
    bound = 1.0 / (IN_CHANNELS ** 0.5)
    return {
        # la_conv1: normal(0, 0.001); bias keeps default Conv2d init (uniform)
        "la1_w": 0.001 * jax.random.normal(k1, (MID_CHANNELS, IN_CHANNELS),
                                           jnp.float32),
        "la1_b": jax.random.uniform(k2, (MID_CHANNELS,), jnp.float32,
                                    -bound, bound),
        # la_conv2: normal(0, 0.001); bias zero-initialized
        "la2_w": 0.001 * jax.random.normal(k3, (STACKED_CONVS, MID_CHANNELS),
                                           jnp.float32),
        "la2_b": jnp.zeros((STACKED_CONVS,), jnp.float32),
        # reduction_conv.conv: normal(0, 0.01), no bias
        "red_w": 0.01 * jax.random.normal(k4, (FEAT_CHANNELS, IN_CHANNELS),
                                          jnp.float32),
        # GroupNorm affine (default: ones / zeros)
        "gn_g": jnp.ones((FEAT_CHANNELS,), jnp.float32),
        "gn_b": jnp.zeros((FEAT_CHANNELS,), jnp.float32),
    }


if __name__ == "__main__":
    key = jax.random.PRNGKey(0)
    kp, kx1, kx2, kx3 = jax.random.split(key, 4)
    params = init_params(kp)

    # 1) bf16 I/O, lane-aligned spatial (16*16), auto batch tile (unrolled path)
    B, H, W = 2, 16, 16
    feat = jax.random.normal(kx1, (B, IN_CHANNELS, H, W), jnp.float32)
    feat_bf = feat.astype(jnp.bfloat16)
    out = jax.block_until_ready(task_decomposition(feat_bf, params))
    ref = task_decomposition_ref(feat_bf.astype(jnp.float32), params)
    assert out.shape == (B, FEAT_CHANNELS, H, W) and out.dtype == jnp.bfloat16
    err = float(jnp.max(jnp.abs(out.astype(jnp.float32) - ref)))
    assert jnp.allclose(out.astype(jnp.float32), ref, atol=2e-2, rtol=2e-2), err

    # 2) bf16 I/O, ragged spatial (10*10 < 128 lanes), bt=4 -> pl.loop path
    B2, H2, W2 = 8, 10, 10
    feat2 = jax.random.normal(kx2, (B2, IN_CHANNELS, H2, W2),
                              jnp.float32).astype(jnp.bfloat16)
    out2 = jax.block_until_ready(task_decomposition(feat2, params, batch_tile=4))
    ref2 = task_decomposition_ref(feat2.astype(jnp.float32), params)
    assert out2.shape == (B2, FEAT_CHANNELS, H2, W2)
    err2 = float(jnp.max(jnp.abs(out2.astype(jnp.float32) - ref2)))
    assert jnp.allclose(out2.astype(jnp.float32), ref2, atol=2e-2, rtol=2e-2), err2

    # 3) f32 I/O, multi-chunk spatial (32*32 -> two 512-lane chunks)
    B3, H3, W3 = 2, 32, 32
    feat3 = jax.random.normal(kx3, (B3, IN_CHANNELS, H3, W3), jnp.float32)
    out3 = jax.block_until_ready(task_decomposition(feat3, params))
    ref3 = task_decomposition_ref(feat3, params)
    err3 = float(jnp.max(jnp.abs(out3 - ref3)))
    assert out3.shape == (B3, FEAT_CHANNELS, H3, W3) and out3.dtype == jnp.float32
    assert jnp.allclose(out3, ref3, atol=1e-2, rtol=1e-2), err3

    print("KERNEL_OK")
</pallas_src>

<mosaic_0001>
module attributes {stable_mosaic.version = 11 : i64} {
  func.func @_task_decomp_kernel(%arg0: i32, %arg1: memref<1x32x256xbf16, #tpu.memory_space<vmem>>, %arg2: memref<4x32xf32, #tpu.memory_space<vmem>>, %arg3: memref<4x1xf32, #tpu.memory_space<vmem>>, %arg4: memref<2x4xf32, #tpu.memory_space<vmem>>, %arg5: memref<2x1xf32, #tpu.memory_space<vmem>>, %arg6: memref<2x32xf32, #tpu.memory_space<vmem>>, %arg7: memref<16x32xf32, #tpu.memory_space<vmem>>, %arg8: memref<16x1xf32, #tpu.memory_space<vmem>>, %arg9: memref<16x1xf32, #tpu.memory_space<vmem>>, %arg10: memref<1x16x256xbf16, #tpu.memory_space<vmem>>, %arg11: memref<16x256xf32, #tpu.memory_space<vmem>>) attributes {dimension_semantics = [#tpu.dimension_semantics<parallel>], iteration_bounds = array<i64: 2>, scalar_prefetch = 0 : i64, scratch_operands = 1 : i64, tpu.core_type = #tpu.core_type<tc>, window_params = [{transform_indices = @transform_0, window_bounds = array<i64: 1, 32, 256>}, {pipeline_mode = #tpu.pipeline_mode<synchronous>, transform_indices = @transform_1, window_bounds = array<i64: 4, 32>}, {pipeline_mode = #tpu.pipeline_mode<synchronous>, transform_indices = @transform_2, window_bounds = array<i64: 4, 1>}, {pipeline_mode = #tpu.pipeline_mode<synchronous>, transform_indices = @transform_3, window_bounds = array<i64: 2, 4>}, {pipeline_mode = #tpu.pipeline_mode<synchronous>, transform_indices = @transform_4, window_bounds = array<i64: 2, 1>}, {pipeline_mode = #tpu.pipeline_mode<synchronous>, transform_indices = @transform_5, window_bounds = array<i64: 2, 32>}, {pipeline_mode = #tpu.pipeline_mode<synchronous>, transform_indices = @transform_6, window_bounds = array<i64: 16, 32>}, {pipeline_mode = #tpu.pipeline_mode<synchronous>, transform_indices = @transform_7, window_bounds = array<i64: 16, 1>}, {pipeline_mode = #tpu.pipeline_mode<synchronous>, transform_indices = @transform_8, window_bounds = array<i64: 16, 1>}, {transform_indices = @transform_9, window_bounds = array<i64: 1, 16, 256>}]} {
    %c0 = arith.constant 0 : index
    %c0_0 = arith.constant 0 : index
    %0 = vector.load %arg2[%c0, %c0_0] : memref<4x32xf32, #tpu.memory_space<vmem>>, vector<4x32xf32>
    %c0_1 = arith.constant 0 : index
    %c0_2 = arith.constant 0 : index
    %1 = vector.load %arg3[%c0_1, %c0_2] : memref<4x1xf32, #tpu.memory_space<vmem>>, vector<4x1xf32>
    %c0_3 = arith.constant 0 : index
    %c0_4 = arith.constant 0 : index
    %2 = vector.load %arg4[%c0_3, %c0_4] : memref<2x4xf32, #tpu.memory_space<vmem>>, vector<2x4xf32>
    %c0_5 = arith.constant 0 : index
    %c0_6 = arith.constant 0 : index
    %3 = vector.load %arg5[%c0_5, %c0_6] : memref<2x1xf32, #tpu.memory_space<vmem>>, vector<2x1xf32>
    %c0_7 = arith.constant 0 : index
    %c0_8 = arith.constant 0 : index
    %4 = vector.load %arg6[%c0_7, %c0_8] : memref<2x32xf32, #tpu.memory_space<vmem>>, vector<2x32xf32>
    %c0_9 = arith.constant 0 : index
    %c0_10 = arith.constant 0 : index
    %5 = vector.load %arg7[%c0_9, %c0_10] : memref<16x32xf32, #tpu.memory_space<vmem>>, vector<16x32xf32>
    %c0_11 = arith.constant 0 : index
    %c0_12 = arith.constant 0 : index
    %6 = vector.load %arg8[%c0_11, %c0_12] : memref<16x1xf32, #tpu.memory_space<vmem>>, vector<16x1xf32>
    %c0_13 = arith.constant 0 : index
    %c0_14 = arith.constant 0 : index
    %7 = vector.load %arg9[%c0_13, %c0_14] : memref<16x1xf32, #tpu.memory_space<vmem>>, vector<16x1xf32>
    %cst = arith.constant 0.000000e+00 : f32
    %8 = vector.broadcast %cst : f32 to vector<32x1xf32>
    %c0_15 = arith.constant 0 : index
    %c0_16 = arith.constant 0 : index
    %c0_17 = arith.constant 0 : index
    %9 = vector.load %arg1[%c0_15, %c0_16, %c0_17] : memref<1x32x256xbf16, #tpu.memory_space<vmem>>, vector<1x32x256xbf16>
    %10 = vector.shape_cast %9 : vector<1x32x256xbf16> to vector<32x256xbf16>
    %11 = arith.extf %10 : vector<32x256xbf16> to vector<32x256xf32>
    %cst_18 = arith.constant dense<0.000000e+00> : vector<32xf32>
    %12 = vector.multi_reduction <add>, %11, %cst_18 [1] : vector<32x256xf32> to vector<32xf32>
    %13 = vector.shape_cast %12 : vector<32xf32> to vector<32x1xf32>
    %14 = arith.addf %8, %13 : vector<32x1xf32>
    %cst_19 = arith.constant 3.906250e-03 : f32
    %15 = vector.broadcast %cst_19 : f32 to vector<32x1xf32>
    %16 = arith.mulf %14, %15 : vector<32x1xf32>
    %cst_20 = arith.constant dense<0.000000e+00> : vector<4x1xf32>
    %17 = tpu.matmul %0, %16, %cst_20 {dimension_numbers = #tpu.dot_dimension_numbers<[1], [0], [0], [1], [0, 0, 1, 1], [], []>} : vector<4x32xf32>, vector<32x1xf32>, vector<4x1xf32> -> vector<4x1xf32>
    %18 = arith.addf %17, %1 : vector<4x1xf32>
    %cst_21 = arith.constant 0.000000e+00 : f32
    %19 = vector.broadcast %cst_21 : f32 to vector<4x1xf32>
    %20 = arith.maximumf %18, %19 : vector<4x1xf32>
    %cst_22 = arith.constant dense<0.000000e+00> : vector<2x1xf32>
    %21 = tpu.matmul %2, %20, %cst_22 {dimension_numbers = #tpu.dot_dimension_numbers<[1], [0], [0], [1], [0, 0, 1, 1], [], []>} : vector<2x4xf32>, vector<4x1xf32>, vector<2x1xf32> -> vector<2x1xf32>
    %22 = arith.addf %21, %3 : vector<2x1xf32>
    %23 = arith.negf %22 : vector<2x1xf32>
    %24 = math.exp %23 : vector<2x1xf32>
    %cst_23 = arith.constant 1.000000e+00 : f32
    %25 = vector.broadcast %cst_23 : f32 to vector<2x1xf32>
    %26 = arith.addf %25, %24 : vector<2x1xf32>
    %27 = arith.divf %25, %26 : vector<2x1xf32>
    %28 = vector.broadcast %27 : vector<2x1xf32> to vector<2x32xf32>
    %29 = arith.mulf %28, %4 : vector<2x32xf32>
    %cst_24 = arith.constant dense<0.000000e+00> : vector<32xf32>
    %30 = vector.multi_reduction <add>, %29, %cst_24 [0] : vector<2x32xf32> to vector<32xf32>
    %31 = vector.shape_cast %30 : vector<32xf32> to vector<1x32xf32>
    %32 = vector.broadcast %31 : vector<1x32xf32> to vector<16x32xf32>
    %33 = arith.mulf %5, %32 : vector<16x32xf32>
    %cst_25 = arith.constant 0.000000e+00 : f32
    %34 = vector.broadcast %cst_25 : f32 to vector<16x1xf32>
    %c0_26 = arith.constant 0 : index
    %c0_27 = arith.constant 0 : index
    %c0_28 = arith.constant 0 : index
    %35 = vector.load %arg1[%c0_26, %c0_27, %c0_28] : memref<1x32x256xbf16, #tpu.memory_space<vmem>>, vector<1x32x256xbf16>
    %36 = vector.shape_cast %35 : vector<1x32x256xbf16> to vector<32x256xbf16>
    %37 = arith.extf %36 : vector<32x256xbf16> to vector<32x256xf32>
    %cst_29 = arith.constant dense<0.000000e+00> : vector<16x256xf32>
    %38 = tpu.matmul %33, %37, %cst_29 {dimension_numbers = #tpu.dot_dimension_numbers<[1], [0], [0], [1], [0, 0, 1, 1], [], []>} : vector<16x32xf32>, vector<32x256xf32>, vector<16x256xf32> -> vector<16x256xf32>
    %c0_30 = arith.constant 0 : index
    %c0_31 = arith.constant 0 : index
    %39 = vector.load %arg11[%c0_30, %c0_31] : memref<16x256xf32, #tpu.memory_space<vmem>>, vector<16x256xf32>
    tpu.vector_store %arg11[%c0_30, %c0_31], %38 {strides = array<i32>} : memref<16x256xf32, #tpu.memory_space<vmem>>, vector<16x256xf32>,
    %cst_32 = arith.constant dense<0.000000e+00> : vector<16xf32>
    %40 = vector.multi_reduction <add>, %38, %cst_32 [1] : vector<16x256xf32> to vector<16xf32>
    %41 = vector.shape_cast %40 : vector<16xf32> to vector<16x1xf32>
    %42 = arith.addf %34, %41 : vector<16x1xf32>
    %cst_33 = arith.constant 3.906250e-03 : f32
    %43 = vector.broadcast %cst_33 : f32 to vector<16x1xf32>
    %44 = arith.mulf %42, %43 : vector<16x1xf32>
    %cst_34 = arith.constant 0.000000e+00 : f32
    %45 = vector.broadcast %cst_34 : f32 to vector<16x1xf32>
    %c0_35 = arith.constant 0 : index
    %c0_36 = arith.constant 0 : index
    %46 = vector.load %arg11[%c0_35, %c0_36] : memref<16x256xf32, #tpu.memory_space<vmem>>, vector<16x256xf32>
    %47 = vector.broadcast %44 : vector<16x1xf32> to vector<16x256xf32>
    %48 = arith.subf %46, %47 : vector<16x256xf32>
    %49 = arith.mulf %48, %48 : vector<16x256xf32>
    %cst_37 = arith.constant dense<0.000000e+00> : vector<16xf32>
    %50 = vector.multi_reduction <add>, %49, %cst_37 [1] : vector<16x256xf32> to vector<16xf32>
    %51 = vector.shape_cast %50 : vector<16xf32> to vector<16x1xf32>
    %52 = arith.addf %45, %51 : vector<16x1xf32>
    %cst_38 = arith.constant 3.906250e-03 : f32
    %53 = vector.broadcast %cst_38 : f32 to vector<16x1xf32>
    %54 = arith.mulf %52, %53 : vector<16x1xf32>
    %cst_39 = arith.constant 9.99999974E-6 : f32
    %55 = vector.broadcast %cst_39 : f32 to vector<16x1xf32>
    %56 = arith.addf %54, %55 : vector<16x1xf32>
    %57 = math.rsqrt %56 : vector<16x1xf32>
    %58 = arith.mulf %57, %6 : vector<16x1xf32>
    %59 = arith.mulf %44, %58 : vector<16x1xf32>
    %60 = arith.subf %7, %59 : vector<16x1xf32>
    %c0_40 = arith.constant 0 : index
    %c0_41 = arith.constant 0 : index
    %61 = vector.load %arg11[%c0_40, %c0_41] : memref<16x256xf32, #tpu.memory_space<vmem>>, vector<16x256xf32>
    %62 = vector.broadcast %58 : vector<16x1xf32> to vector<16x256xf32>
    %63 = arith.mulf %61, %62 : vector<16x256xf32>
    %64 = vector.broadcast %60 : vector<16x1xf32> to vector<16x256xf32>
    %65 = arith.addf %63, %64 : vector<16x256xf32>
    %66 = arith.negf %65 : vector<16x256xf32>
    %67 = math.exp %66 : vector<16x256xf32>
    %cst_42 = arith.constant 1.000000e+00 : f32
    %68 = vector.broadcast %cst_42 : f32 to vector<16x256xf32>
    %69 = arith.addf %68, %67 : vector<16x256xf32>
    %70 = arith.divf %68, %69 : vector<16x256xf32>
    %71 = arith.mulf %65, %70 : vector<16x256xf32>
    %72 = arith.truncf %71 : vector<16x256xf32> to vector<16x256xbf16>
    %c0_43 = arith.constant 0 : index
    %c0_44 = arith.constant 0 : index
    %c0_45 = arith.constant 0 : index
    %73 = vector.load %arg10[%c0_43, %c0_44, %c0_45] : memref<1x16x256xbf16, #tpu.memory_space<vmem>>, vector<1x16x256xbf16>
    %74 = vector.shape_cast %73 : vector<1x16x256xbf16> to vector<16x256xbf16>
    %75 = vector.shape_cast %72 : vector<16x256xbf16> to vector<1x16x256xbf16>
    tpu.vector_store %arg10[%c0_43, %c0_44, %c0_45], %75 {strides = array<i32>} : memref<1x16x256xbf16, #tpu.memory_space<vmem>>, vector<1x16x256xbf16>,
    return
  }
  func.func @transform_0(%arg0: i32) -> (i32, i32, i32) {
    %c0_i32 = arith.constant 0 : i32
    %c0_i32_0 = arith.constant 0 : i32
    %c0_i32_1 = arith.constant 0 : i32
    return %arg0, %c0_i32, %c0_i32_0 : i32, i32, i32
  }
  func.func @transform_1(%arg0: i32) -> (i32, i32) {
    %c0_i32 = arith.constant 0 : i32
    %c0_i32_0 = arith.constant 0 : i32
    %c0_i32_1 = arith.constant 0 : i32
    return %c0_i32, %c0_i32_0 : i32, i32
  }
  func.func @transform_2(%arg0: i32) -> (i32, i32) {
    %c0_i32 = arith.constant 0 : i32
    %c0_i32_0 = arith.constant 0 : i32
    %c0_i32_1 = arith.constant 0 : i32
    return %c0_i32, %c0_i32_0 : i32, i32
  }
  func.func @transform_3(%arg0: i32) -> (i32, i32) {
    %c0_i32 = arith.constant 0 : i32
    %c0_i32_0 = arith.constant 0 : i32
    %c0_i32_1 = arith.constant 0 : i32
    return %c0_i32, %c0_i32_0 : i32, i32
  }
  func.func @transform_4(%arg0: i32) -> (i32, i32) {
    %c0_i32 = arith.constant 0 : i32
    %c0_i32_0 = arith.constant 0 : i32
    %c0_i32_1 = arith.constant 0 : i32
    return %c0_i32, %c0_i32_0 : i32, i32
  }
  func.func @transform_5(%arg0: i32) -> (i32, i32) {
    %c0_i32 = arith.constant 0 : i32
    %c0_i32_0 = arith.constant 0 : i32
    %c0_i32_1 = arith.constant 0 : i32
    return %c0_i32, %c0_i32_0 : i32, i32
  }
  func.func @transform_6(%arg0: i32) -> (i32, i32) {
    %c0_i32 = arith.constant 0 : i32
    %c0_i32_0 = arith.constant 0 : i32
    %c0_i32_1 = arith.constant 0 : i32
    return %c0_i32, %c0_i32_0 : i32, i32
  }
  func.func @transform_7(%arg0: i32) -> (i32, i32) {
    %c0_i32 = arith.constant 0 : i32
    %c0_i32_0 = arith.constant 0 : i32
    %c0_i32_1 = arith.constant 0 : i32
    return %c0_i32, %c0_i32_0 : i32, i32
  }
  func.func @transform_8(%arg0: i32) -> (i32, i32) {
    %c0_i32 = arith.constant 0 : i32
    %c0_i32_0 = arith.constant 0 : i32
    %c0_i32_1 = arith.constant 0 : i32
    return %c0_i32, %c0_i32_0 : i32, i32
  }
  func.func @transform_9(%arg0: i32) -> (i32, i32, i32) {
    %c0_i32 = arith.constant 0 : i32
    %c0_i32_0 = arith.constant 0 : i32
    %c0_i32_1 = arith.constant 0 : i32
    return %arg0, %c0_i32, %c0_i32_0 : i32, i32, i32
  }
}

</mosaic_0001>

<bundles_post_ra>
// kernel: tpu_custom_call.1
= control target key start
LH: loop header
LB: loop body
LE: loop exit
PB: predicated region body
PF: predicated region fallthrough
CT: control target
= control target key end

     0   :  { %14 = vsyncpa [#allocation4], 0  ;;  %s1398_s0 = inlined_call_operand.hbm [shape: bf16[2,32,256], index: 0, kind: input, shape index: {}]   ;;  %s1399_s1 = inlined_call_operand.vmem [shape: f32[4,32], index: 1, kind: input, shape index: {}]   ;;  %s1400_s2 = inlined_call_operand.vmem [shape: f32[4,1], index: 2, kind: input, shape index: {}]   ;;  %s1401_s3 = inlined_call_operand.vmem [shape: f32[2,4], index: 3, kind: input, shape index: {}]   ;;  %s1402_s4 = inlined_call_operand.vmem [shape: f32[2,1], index: 4, kind: input, shape index: {}]   ;;  %s1403_s5 = inlined_call_operand.vmem [shape: f32[2,32], index: 5, kind: input, shape index: {}]   ;;  %s1404_s6 = inlined_call_operand.vmem [shape: f32[16,32], index: 6, kind: input, shape index: {}]   ;;  %s1405_s7 = inlined_call_operand.vmem [shape: f32[16,1], index: 7, kind: input, shape index: {}]   ;;  %s1406_s8 = inlined_call_operand.vmem [shape: f32[16,1], index: 8, kind: input, shape index: {}]   ;;  %s1407_s9 = inlined_call_operand.hbm [shape: bf16[2,16,256], index: 9, kind: output, shape index: {}]  }
   0x1   :  { %16 = vsyncpa [#allocation4 + $0x1], 0 }
   0x2   :  { %17 = vsyncpa [#allocation5], 0 }
   0x3   :  { %19 = vsyncpa [#allocation5 + $0x1], 0  ;;  %s1168_s30 = smov 0   ;;  %s1170_s10 = smov 0  }
   0x4   :  { %s1172_s11 = smov 0   ;;  %s1174_s12 = smov 0  }
   0x5 LB: > { %s1189_s13 = sadd.s32 4294967295, %s1106_s12   ;;  %s855_s14 = sadd.s32 4294967294, %s1106_s12   ;;  %s1106_s12 = sphi %s1174_s12, %s1420_s12   ;;  %s1102_s11 = sphi %s1172_s11, %s1419_s11   ;;  %s1098_s10 = sphi %s1170_s10, %s1418_s10   ;;  %s1094_s30 = sphi %s1168_s30, %s1417_s30  }
   0x6   : > { %s1193_s15 = sadd.s32 1, %s1106_s12   ;;  %s32_s16 = sadd.s32 1, %s1102_s11 }
   0x7   : > { %s29_s17 = ssub.s32 %s1106_s12, %s1193_s15  ;;  %p39_p0 = scmp.ne.s32.totalorder %s1102_s11, %s1098_s10 }
   0x8   : > { %p30_p1 = scmp.eq.s32.totalorder %s29_s17, 0  ;;  %p40_p2 = scmp.eq.s32.totalorder %s1106_s12, 0 }
   0x9   : > { %p45_p3 = scmp.ne.s32.totalorder %s1098_s10, %s1094_s30  ;;  %p46_p4 = scmp.eq.s32.totalorder %s1189_s13, 0 }
   0xa   : > { %s1205_s18 = scalar_select %p30_p1, %s1102_s11, %s32_s16  }
   0xb   : > { %p1207_p5 = por %p40_p2, %p39_p0  ;;  %p1211_p6 = por %p46_p4, %p45_p3 }
   0xc   : > { %p237_p7 = scmp.eq.s32.totalorder %s1189_s13, 1  ;;  %p243_p8 = scmp.eq.s32.totalorder %s855_s14, 1 }
   0xd   : > { %p938_p10 = scmp.lt.s32.totalorder %s1106_s12, 2  ;;  %s287_s23 = sand.u32 1, %s1102_s11  }
   0xe   : > { %p1218_p11 = por %p237_p7, %p39_p0  ;;  %p1222_p12 = por %p243_p8, %p45_p3 }
   0xf   : > { %s881_s24 = sshll.u32 %s1106_s12, 9  ;;  %s858_s25 = sshll.u32 %s287_s23, 5 }
  0x10   : > { %s1411_s21 = scalar_select %p1218_p11, 1, 0 }
  0x11   : > { %s1412_s22 = scalar_select %p1222_p12, 1, 0 }
  0x12   : > { %s1231_s28 = scalar_lea.hbm %s1398_s0, %s881_s24  ;;  %s291_s29 = scalar_lea.vmem [#allocation3], %s858_s25 }
  0x13   : > { %s298_s14 = sshll.u32 %s291_s29, 4  ;;  %p1235_p13 = pnand %p938_p10, %p1207_p5  ;;  %s1239_s14 = int_to_ptr.vmem [resolvable:$true] %s298_s14 }
  0x14   : > { %s1241_s17 = scalar_lea.sflag [#allocation4], %s287_s23  ;;  %s1010_s26 = scalar_lea.hbm %s1231_s28, 512 }
  0x15   : > { %p1011_p0 = scmp.ne.s32.totalorder %s1231_s28, %s1010_s26  ;;  %p1012_p1 = pneg %p1235_p13 }
  0x16   : > { %s1015_s25 = scalar_lea.hbm %s1398_s0, 1024  ;;  %p1016_p4 = scmp.lt.u32.totalorder %s1231_s28, %s1398_s0 }
  0x17   : > { %p1013_p2 = pnand %p1012_p1, %p1011_p0  ;;  %p1017_p5 = scmp.lt.u32.totalorder %s1015_s25, %s1010_s26 }
  0x18   : > { %p1019_p8 = scmp.lt.u32.totalorder %s1010_s26, %s1231_s28 }
  0x19   : > { %p1014_p3 = pneg %p1013_p2  ;;  %p1018_p7 = por %p1017_p5, %p1016_p4 }
  0x1b   : > { %p1020_p10 = por %p1019_p8, %p1018_p7 }
  0x1d   : > { %p1021_p9 = pnand %p1020_p10, %p1014_p3 }
  0x1f   : > { %1024 = shalt.err (!%p1021_p9)
}
  0x20   : > { %s1025_s23 = scalar_lea.vmem %s1239_s14, 512  ;;  %s1108_s24 = smov [#allocation3]  }
  0x21   : > { %p1026_p0 = scmp.ne.s32.totalorder %s1239_s14, %s1025_s23  ;;  %s1030_s19 = sshll.u32 %s1108_s24, 4  ;;  %s1031_s19 = int_to_ptr.vmem [resolvable:$false] %s1030_s19 }
  0x22   : > { %s1032_s27 = scalar_lea.vmem %s1031_s19, 1024  ;;  %p1033_p11 = scmp.lt.s32.totalorder %s1239_s14, %s1031_s19 }
  0x23   : > { %p1028_p2 = pnand %p1026_p0, %p1012_p1  ;;  %p1034_p4 = scmp.lt.s32.totalorder %s1032_s27, %s1025_s23 }
  0x25   : > { %p1029_p12 = pneg %p1028_p2  ;;  %p1035_p5 = por %p1034_p4, %p1033_p11 }
  0x27   : > { %p1036_p7 = pnand %p1035_p5, %p1029_p12 }
  0x29   : > { %1039 = shalt.err (!%p1036_p7)
}
  0x2a   : > { %s1109_s26 = smov 128   ;;  %s1110_s25 = smov 8  }
  0x2b   : > { %933 = dma.hbm_to_vmem [thread:$0]  (!%p1235_p13), %s1231_s28, 512, %s1239_s14, %s1241_s17, %s1109_s26, %s1109_s26, %s1110_s25  }
  0x2c   : > { %p861_p9 = scmp.ge.s32.totalorder %s1106_s12, 1  ;;  %p306_p1 = scmp.lt.s32.totalorder %s1106_s12, 3 }
  0x2e   : > { %p307_p3 = pnand %p861_p9, %p306_p1 }
  0x2f   : > { %s1272_s29 = sand.u32 (!%p307_p3), 1, %s1098_s10  }
  0x30   : > { %310 = sbr.rel (%p307_p3) target bundleno = 1532 (0x5fc), region = 56  ;;  %s862_s23 = sshll.u32 (!%p307_p3), %s1272_s29, 5 }
  0x31   : > { %s313_s24 = scalar_lea.sflag (!%p307_p3), [#allocation4], %s1272_s29  ;;  %s316_s19 = scalar_lea.vmem (!%p307_p3), [#allocation3], %s862_s23 }
  0x37   : > { %1085 = dma.done.wait (%p1211_p6), %s313_s24, 512  }
  0x38   : > { %1087 = vsyncadd (%p1211_p6), %s313_s24, 4294966784  ;;  %v1280_v0 = vld [vmem:[%s316_s19 + $0x10] sm:$0xff]  ;;  %v1282_v1 = vld [vmem:[%s316_s19] sm:$0xff]  ;;  %v1111_v16 = vmov 0.0|0.0   ;;  %vm1112_vm0 = vmmov 0   ;;  %v1113_v17 = vmov 0.0  }
  0x39   : > { %v1284_v2 = vld [vmem:[%s316_s19 + $0x18] sm:$0xff]  ;;  %v370_v3 = vunpack.c.l.bf16 %v1280_v0  ;;  %v371_v4 = vunpack.c.h.bf16 %v1280_v0  ;;  %v366_v5 = vunpack.c.l.bf16 %v1282_v1  ;;  %v367_v6 = vunpack.c.h.bf16 %v1282_v1  ;;  %v1290_v7 = vld [vmem:[%s316_s19 + $0x8] sm:$0xff]  ;;  %908 = vmatprep.subr.bf16.mxu0 %v1111_v16  ;;  %900 = vmatprep.mubr.msk.f32.mxu0 %vm1112_vm0, %v1113_v17  ;;  %v351_v28 = vld [vmem:[%s1399_s1] sm:$0xf]  ;;  %s863_s20 = sshll.u32 %s1272_s29, 4  ;;  %s884_s16 = sshll.u32 %s1189_s13, 8 }
  0x3a   : > { %v372_v8 = vunpack.c.l.bf16 %v1284_v2  ;;  %v373_v9 = vunpack.c.h.bf16 %v1284_v2  ;;  %v368_v10 = vunpack.c.l.bf16 %v1290_v7  ;;  %v369_v11 = vunpack.c.h.bf16 %v1290_v7  ;;  %639 = vmatprep.mubr.f32.mxu1 %v1113_v17  ;;  %v352_v29 = vld [vmem:[%s1400_s2] sm:$0xf]  ;;  %v357_v60 = vld [vmem:[%s1404_s6 + $0x8] sm:$0xff]  ;;  %s350_s28 = scalar_lea.vmem [#allocation6], %s863_s20  ;;  %s1354_s26 = scalar_lea.hbm %s1407_s9, %s884_s16 }
  0x3b   : > { %v380_v12 = vadd.f32 %v371_v4, %v370_v3  ;;  %v374_v13 = vadd.f32 %v367_v6, %v366_v5  ;;  %vm394_vm1 = vcmask 261120   ;;  %vm473_vm2 = vcmask 1043456   ;;  %v353_v34 = vld [vmem:[%s1401_s3] sm:$0x3]  ;;  %s782_s14 = sshll.u32 %s350_s28, 4  ;;  %s769_s25 = scalar_lea.sflag [#allocation5], %s1272_s29  ;;  %s1349_s14 = int_to_ptr.vmem [resolvable:$true] %s782_s14 }
  0x3c   : > { %v383_v14 = vadd.f32 %v373_v9, %v372_v8  ;;  %v377_v15 = vadd.f32 %v369_v11, %v368_v10  ;;  %vm469_vm3 = vcmask 31744   ;;  %v1114_v35 = vmov 0   ;;  %v354_v36 = vld [vmem:[%s1402_s4] sm:$0x3]  ;;  %s1040_s23 = scalar_lea.vmem %s1349_s14, 256  ;;  %p1414_p11 = scmp.ne.s32.totalorder %s1411_s21, 0 }
  0x3d   : > { %381 = vadd.xlane.f32.xlu1 %v380_v12  ;;  %375 = vadd.xlane.f32.xlu0 %v374_v13  ;;  %v922_v44 = vcombine.high %v1282_v1, %v1290_v7  ;;  %v923_v45 = vcombine.low %v1282_v1, %v1290_v7  ;;  %v924_v46 = vcombine.high %v1280_v0, %v1284_v2  ;;  %v355_v48 = vld [vmem:[%s1403_s5] sm:$0x3]  ;;  %vm559_vm4 = vcmask 254976   ;;  %p1041_p6 = scmp.ne.s32.totalorder %s1349_s14, %s1040_s23  ;;  %s1115_s13 = smov [#allocation6]  }
  0x3e   : > { %980 = vset.pattern.permute.xlu0 %v1114_v35  ;;  %981 = vset.pattern.permute.xlu1 %v1114_v35  ;;  %v925_v47 = vcombine.low %v1280_v0, %v1284_v2  ;;  %v356_v57 = vld [vmem:[%s1404_s6] sm:$0xff]  ;;  %s1044_s24 = sshll.u32 %s1115_s13, 4  ;;  %s1045_s24 = int_to_ptr.vmem [resolvable:$false] %s1044_s24 }
  0x3f   : > { %915 = vmatprep.subr.bf16.mxu1 %v922_v44  ;;  %p1042_p12 = pnand %p1041_p6, %p1414_p11  ;;  %s1046_s19 = scalar_lea.vmem %s1045_s24, 512 }
  0x40   : > { %917 = vmatpush1.bf16.msra.mxu1 %v923_v45  ;;  %p1047_p8 = scmp.lt.s32.totalorder %s1349_s14, %s1045_s24  ;;  %p1048_p10 = scmp.lt.s32.totalorder %s1046_s19, %s1040_s23 }
  0x41   : > { %384 = vadd.xlane.f32.xlu1 %v383_v14  ;;  %378 = vadd.xlane.f32.xlu0 %v377_v15  ;;  %p1043_p13 = pneg %p1042_p12 }
  0x42   : > { %919 = vmatprep.subr.bf16.mxu1 %v924_v46  ;;  %p1049_p0 = por %p1048_p10, %p1047_p8 }
  0x44   : > { %921 = vmatpush1.bf16.msra.mxu1 %v925_v47  ;;  %p1050_p2 = pnand %p1049_p0, %p1043_p13 }
  0xca   : > { %v382_v18 = vpop.xlane.xlu1 %381  ;;  %v376_v19 = vpop.xlane.xlu0 %375 }
  0xcb   : > { %v390_v22 = vmul.f32 0.00390625, %v376_v19  ;;  %v392_v24 = vmul.f32 0.00390625, %v382_v18 }
  0xce   : > { %v385_v20 = vpop.xlane.xlu1 %384  ;;  %v379_v21 = vpop.xlane.xlu0 %378 }
  0xcf   : > { %v391_v23 = vmul.f32 0.00390625, %v379_v21  ;;  %v393_v25 = vmul.f32 0.00390625, %v385_v20 }
  0xd1   : > { %v909_v26 = vpack.c.bf16 %v391_v23, %v390_v22  ;;  %v912_v27 = vpack.c.bf16 %v393_v25, %v392_v24  ;;  %v358_v24 = vld [vmem:[%s1405_s7] sm:$0xff] }
  0xd3   : > { %910 = vmatpush3.bf16.msra.mxu0 %v909_v26 }
  0xd4   : > { %911 = vmatprep.subr.bf16.mxu0 %v1111_v16 }
  0xd7   : > { %913 = vmatpush3.bf16.msra.mxu0 %v912_v27  ;;  %v359_v27 = vld [vmem:[%s1405_s7 + $0x8] sm:$0xff] }
  0xd8   : > { %903 = vmatprep.subr.mxu0 %v1113_v17 }
  0xda   : > { %901 = vmatmul.mubr.msk.f32.vlgmr.msra.gmra.mrb[0].mxu0 %vm394_vm1, %v351_v28 }
  0xdb   : > { %905 = vmatprep.mubr.msk.f32.mxu0 %vm1112_vm0, %v1113_v17 }
 0x1ad   : > { %v464_v30 = vpop.f32.mrb[0].mxu0 }
 0x1ae   : > { %v465_v31 = vadd.f32 %v464_v30, %v352_v29  ;;  %v902_v32 = vpop.f32.mrb[1].mxu0 }
 0x1b0   : > { %v468_v33 = vmax.f32 %v465_v31, 0.0  ;;  %v360_v31 = vld [vmem:[%s1406_s8] sm:$0xff] }
 0x1b2   : > { %904 = vmatpush3.msk.msra.mxu0 %vm473_vm2, %v468_v33 }
 0x1b3   : > { %906 = vmatmul.mubr.msk.f32.vlgmr.msra.gmra.mrb[2].mxu0 %vm469_vm3, %v353_v34  ;;  %v361_v34 = vld [vmem:[%s1406_s8 + $0x8] sm:$0xff] }
 0x286   : > { %v543_v37 = vpop.f32.mrb[2].mxu0 }
 0x287   : > { %v544_v38 = vadd.f32 %v543_v37, %v354_v36  ;;  %v907_v39 = vpop.f32.mrb[3].mxu0 }
 0x289   : > { %v867_v40 = vmul.f32 -1.442695, %v544_v38 }
 0x28b   : > { %986 = vpow2.f32 %v867_v40 }
 0x295   : > { %v987_v41 = vpop.eup %986 }
 0x296   : > { %v550_v42 = vadd.f32 1.0, %v987_v41 }
 0x298   : > { %988 = vrcp.f32 %v550_v42 }
 0x2a2   : > { %v989_v43 = vpop.eup %988 }
 0x2a3   : > { %555 = vperm.xlu0 %980, %v989_v43  }
 0x322   : > { %v556_v49 = vpop.permute.xlu0 %555 }
 0x323   : > { %v558_v50 = vmul.f32 %v556_v49, %v355_v48 }
 0x325   : > { %v560_v51 = vsel %vm559_vm4, %v558_v50, 0.0 }
 0x326   : > { %v561_v52 = vrot.slane %v560_v51, 4 }
 0x328   : > { %v562_v53 = vadd.f32 %v561_v52, %v560_v51 }
 0x32a   : > { %v563_v54 = vrot.slane %v562_v53, 2 }
 0x32c   : > { %v564_v55 = vadd.f32 %v563_v54, %v562_v53 }
 0x32e   : > { %v565_v56 = vrot.slane %v564_v55, 1 }
 0x330   : > { %v566_v58 = vadd.f32 %v565_v56, %v564_v55 }
 0x332   : > { %v567_v59 = vmul.f32 %v566_v58, %v356_v57  ;;  %v568_v61 = vmul.f32 %v566_v58, %v357_v60 }
 0x334   : > { %868 = vmatmul.mubr.msk.f32.vlgmr.msra.gmra.mrb[0].mxu1 %vm394_vm1, %v567_v59 }
 0x335   : > { %645 = vmatprep.mubr.f32.mxu1 %v1113_v17 }
 0x338   : > { %869 = vmatmul.mubr.msk.f32.gmra.mrb[2].mxu1 %vm394_vm1, %v568_v61 }
 0x407   : > { %v641_v62 = vpop.f32.mrb[0].mxu1 }
 0x408   : > { %v643_v63 = vpop.f32.mrb[1].mxu1 }
 0x409   : > { %v656_v0 = vadd.f32 %v643_v63, %v641_v62 }
 0x40b   : > { %657 = vadd.xlane.f32.xlu1 %v656_v0  ;;  %v647_v1 = vpop.f32.mrb[2].mxu1 }
 0x40c   : > { %v649_v2 = vpop.f32.mrb[3].mxu1 }
 0x40d   : > { %v659_v3 = vadd.f32 %v649_v2, %v647_v1 }
 0x40f   : > { %660 = vadd.xlane.f32.xlu1 %v659_v3 }
 0x498   : > { %v658_v4 = vpop.xlane.xlu1 %657 }
 0x499   : > { %v664_v5 = vmul.f32 0.00390625, %v658_v4 }
 0x49b   : > { %v670_v6 = vsub.f32 %v641_v62, %v664_v5  ;;  %v671_v7 = vsub.f32 %v643_v63, %v664_v5 }
 0x49c   : > { %v661_v8 = vpop.xlane.xlu1 %660 }
 0x49d   : > { %v665_v9 = vmul.f32 0.00390625, %v661_v8  ;;  %v674_v10 = vmul.f32 %v670_v6, %v670_v6  ;;  %v675_v11 = vmul.f32 %v671_v7, %v671_v7 }
 0x49f   : > { %v678_v12 = vadd.f32 %v675_v11, %v674_v10  ;;  %v672_v13 = vsub.f32 %v647_v1, %v665_v9  ;;  %v673_v14 = vsub.f32 %v649_v2, %v665_v9 }
 0x4a1   : > { %679 = vadd.xlane.f32.xlu1 %v678_v12  ;;  %v676_v15 = vmul.f32 %v672_v13, %v672_v13  ;;  %v677_v16 = vmul.f32 %v673_v14, %v673_v14 }
 0x4a3   : > { %v681_v17 = vadd.f32 %v677_v16, %v676_v15 }
 0x4a5   : > { %682 = vadd.xlane.f32.xlu1 %v681_v17 }
 0x52e   : > { %v680_v18 = vpop.xlane.xlu1 %679 }
 0x52f   : > { %v686_v19 = vmul.f32 0.00390625, %v680_v18 }
 0x531   : > { %v688_v20 = vadd.f32 1e-05, %v686_v19 }
 0x532   : > { %v683_v21 = vpop.xlane.xlu1 %682 }
 0x533   : > { %990 = vrsqrt.f32 %v688_v20  ;;  %v687_v22 = vmul.f32 0.00390625, %v683_v21 }
 0x535   : > { %v689_v23 = vadd.f32 1e-05, %v687_v22 }
 0x537   : > { %992 = vrsqrt.f32 %v689_v23 }
 0x53d   : > { %v991_v25 = vpop.eup %990 }
 0x53e   : > { %v692_v26 = vmul.f32 %v991_v25, %v358_v24 }
 0x540   : > { %700 = vperm.xlu1 %981, %v692_v26   ;;  %v694_v30 = vmul.f32 %v692_v26, %v664_v5 }
 0x541   : > { %v993_v28 = vpop.eup %992 }
 0x542   : > { %v693_v29 = vmul.f32 %v993_v28, %v359_v27  ;;  %v696_v32 = vsub.f32 %v360_v31, %v694_v30 }
 0x544   : > { %705 = vperm.xlu1 %981, %v693_v29   ;;  %v695_v33 = vmul.f32 %v693_v29, %v665_v9 }
 0x546   : > { %v697_v35 = vsub.f32 %v361_v34, %v695_v33 }
 0x548   : > { %714 = vperm.xlu1 %981, %v696_v32  }
 0x54c   : > { %719 = vperm.xlu1 %981, %v697_v35  }
 0x5bf   : > { %v701_v36 = vpop.permute.xlu1 %700 }
 0x5c0   : > { %v708_v38 = vmul.f32 %v701_v36, %v641_v62  ;;  %v709_v39 = vmul.f32 %v701_v36, %v643_v63 }
 0x5c3   : > { %v706_v37 = vpop.permute.xlu1 %705 }
 0x5c4   : > { %v710_v43 = vmul.f32 %v706_v37, %v647_v1  ;;  %v711_v44 = vmul.f32 %v706_v37, %v649_v2 }
 0x5c7   : > { %v715_v40 = vpop.permute.xlu1 %714 }
 0x5c8   : > { %v722_v41 = vadd.f32 %v715_v40, %v708_v38  ;;  %v723_v42 = vadd.f32 %v715_v40, %v709_v39 }
 0x5ca   : > { %v870_v45 = vmul.f32 -1.442695, %v722_v41  ;;  %v871_v46 = vmul.f32 -1.442695, %v723_v42 }
 0x5cb   : > { %v720_v47 = vpop.permute.xlu1 %719 }
 0x5cc   : > { %994 = vpow2.f32 %v870_v45  ;;  %v724_v48 = vadd.f32 %v720_v47, %v710_v43  ;;  %v725_v49 = vadd.f32 %v720_v47, %v711_v44 }
 0x5cd   : > { %996 = vpow2.f32 %v871_v46 }
 0x5ce   : > { %v872_v50 = vmul.f32 -1.442695, %v724_v48  ;;  %v873_v51 = vmul.f32 -1.442695, %v725_v49 }
 0x5d0   : > { %998 = vpow2.f32 %v872_v50 }
 0x5d1   : > { %1000 = vpow2.f32 %v873_v51 }
 0x5d6   : > { %v995_v52 = vpop.eup %994 }
 0x5d7   : > { %v997_v53 = vpop.eup %996  ;;  %v738_v54 = vadd.f32 1.0, %v995_v52 }
 0x5d8   : > { %v739_v55 = vadd.f32 1.0, %v997_v53 }
 0x5d9   : > { %1002 = vrcp.f32 %v738_v54 }
 0x5da   : > { %v999_v56 = vpop.eup %998  ;;  %1004 = vrcp.f32 %v739_v55 }
 0x5db   : > { %v1001_v57 = vpop.eup %1000  ;;  %v740_v58 = vadd.f32 1.0, %v999_v56 }
 0x5dc   : > { %v741_v59 = vadd.f32 1.0, %v1001_v57 }
 0x5dd   : > { %1006 = vrcp.f32 %v740_v58 }
 0x5de   : > { %1008 = vrcp.f32 %v741_v59 }
 0x5e3   : > { %v1003_v60 = vpop.eup %1002 }
 0x5e4   : > { %v1005_v61 = vpop.eup %1004  ;;  %v750_v62 = vmul.f32 %v1003_v60, %v722_v41 }
 0x5e5   : > { %v751_v63 = vmul.f32 %v1005_v61, %v723_v42 }
 0x5e7   : > { %v1007_v0 = vpop.eup %1006  ;;  %v882_v1 = vpack.c.bf16 %v751_v63, %v750_v62 }
 0x5e8   : > { %v1009_v2 = vpop.eup %1008  ;;  %v752_v3 = vmul.f32 %v1007_v0, %v724_v48 }
 0x5e9   : > { %766 = vst [vmem:[%s350_s28] sm:$0xff] %v882_v1  ;;  %v753_v4 = vmul.f32 %v1009_v2, %v725_v49 }
 0x5eb   : > { %v883_v5 = vpack.c.bf16 %v753_v4, %v752_v3 }
 0x5ed   : > { %767 = vst [vmem:[%s350_s28 + $0x8] sm:$0xff] %v883_v5 }
 0x5ee   : > { %1053 = shalt.err (!%p1050_p2)
}
 0x5ef   : > { %s1054_s20 = scalar_lea.hbm %s1354_s26, 256  ;;  %s1058_s17 = scalar_lea.hbm %s1407_s9, 512 }
 0x5f0   : > { %p1055_p4 = scmp.ne.s32.totalorder %s1354_s26, %s1054_s20  ;;  %p1059_p9 = scmp.lt.u32.totalorder %s1354_s26, %s1407_s9 }
 0x5f1   : > { %p1060_p1 = scmp.lt.u32.totalorder %s1058_s17, %s1054_s20  ;;  %p1062_p6 = scmp.lt.u32.totalorder %s1054_s20, %s1354_s26 }
 0x5f2   : > { %p1056_p5 = pnand %p1055_p4, %p1414_p11 }
 0x5f3   : > { %p1061_p3 = por %p1060_p1, %p1059_p9 }
 0x5f4   : > { %p1057_p7 = pneg %p1056_p5 }
 0x5f5   : > { %p1063_p12 = por %p1062_p6, %p1061_p3 }
 0x5f7   : > { %p1064_p13 = pnand %p1063_p12, %p1057_p7 }
 0x5f9   : > { %1067 = shalt.err (!%p1064_p13)
}
 0x5fa   : > { %s1116_s23 = smov 128   ;;  %s1117_s24 = smov 8  }
 0x5fb   : > { %928 = dma.vmem_to_hbm [thread:$0]  (%p1414_p11), %s1349_s14, 256, %s1354_s26, %s769_s25, %s1116_s23, %s1116_s23, %s1117_s24  }
 0x5fc PF: > { %s797_s19 = sand.u32 1, %s1094_s30   ;;  %p1415_p8 = scmp.ne.s32.totalorder %s1412_s22, 0 }
 0x5fd   : > { %p1416_p10 = scmp.ge.s32.totalorder %s1106_s12, 2  ;;  %s798_s20 = scalar_lea.sflag [#allocation5], %s797_s19 }
 0x5ff   : > { %p935_p0 = pnand %p1416_p10, %p1415_p8 }
 0x601   : > { %1089 = dma.done.wait (!%p935_p0), %s798_s20, 256  }
 0x602   : > { %1091 = vsyncadd (!%p935_p0), %s798_s20, 4294967040  ;;  %p22_p2 = scmp.ge.s32.totalorder %s1193_s15, 4   ;;  %s1417_s30 = smov %s1098_s10 }
 0x603   : > { %s1418_s10 = smov %s1102_s11  ;;  %s1419_s11 = smov %s1205_s18 }
 0x604   : > { %s1420_s12 = smov %s1193_s15  ;;  %24 = sbr.rel (!%p22_p2) target bundleno = 5 (0x5), region = 101 }
 0x60b   :  { %803 = vsyncpa [#allocation4], 1 }
 0x60c   :  { %805 = vsyncpa [#allocation4 + $0x1], 1 }
 0x60d   :  { %806 = vsyncpa [#allocation5], 1 }
 0x60e   :  { %808 = vsyncpa [#allocation5 + $0x1], 1 }

</bundles_post_ra>
